<compile_context>
chip_gen: v7x
topology: tpu7x:2x2x1
jax: 0.10.0
libtpu: 0.0.40
codegen_flags: <defaults>
</compile_context>

<pallas_src>
import functools
import math

import jax
import jax.numpy as jnp
from jax import lax
from jax.experimental import pallas as pl
from jax.experimental.pallas import tpu as pltpu


def _round_up(x: int, m: int) -> int:
    return ((x + m - 1) // m) * m


def _vmem_capacity_bytes() -> int:
    """Physical VMEM of the attached TPU (64 MiB on v7x, 128 MiB on v5e/v6e)."""
    try:
        info = pltpu.get_tpu_info()
        return int(getattr(info, "vmem_capacity_bytes", 64 << 20))
    except Exception:
        return 64 << 20  # conservative default (v7x)


# -----------------------------------------------------------------------------
# Pallas kernel: one (batch, length-tile) step of 'same' conv (stride 1) + bias + GELU
# -----------------------------------------------------------------------------
def _conv1d_gelu_kernel(x_ref, xl_ref, xr_ref, w_ref, b_ref, o_ref, *, l_total):
    # x_ref : (1, TL, C_in)    current length tile (NWC)
    # xl_ref: (1, HALO, C_in)  halo block just before the tile (clamped at the left edge)
    # xr_ref: (1, HALO, C_in)  halo block just after  the tile (clamped at the right edge)
    # w_ref : (K, C_in, C_out) tap-major weights, already in the MXU compute dtype
    # b_ref : (1, C_out)       bias (f32)
    # o_ref : (1, TL, C_out)   output tile
    # l_total: static length (rows) of the array actually passed along L.
    TL = o_ref.shape[1]
    HALO = xl_ref.shape[1]
    K = w_ref.shape[0]
    pad_left = (K - 1) // 2            # PyTorch padding='same' (stride 1): extra on right
    cdt = w_ref.dtype                  # bf16 (MXU fast path) or f32 (exact parity)

    if K > 1:
        # Build the (HALO + TL + HALO, C_in) window in ONE pass, already in the compute
        # dtype.  Halo rows whose intended global index lies outside [0, l_total) are the
        # conv's 'same' zero padding (this also neutralizes the clamped edge blocks).
        base = pl.program_id(1) * TL
        rows = lax.broadcasted_iota(jnp.int32, (HALO, 1), 0)
        xl = jnp.where(base - HALO + rows >= 0, xl_ref[0], 0).astype(cdt)
        xr = jnp.where(base + TL + rows < l_total, xr_ref[0], 0).astype(cdt)
        window = jnp.concatenate([xl, x_ref[0].astype(cdt), xr], axis=0)
        start = HALO - pad_left
    else:
        window = x_ref[0].astype(cdt)
        start = 0

    # Tap 0 initializes the accumulator; taps 1..K-1 accumulate.  K is a small static
    # Python int -> unrolled chain of MXU matmuls with f32 accumulation.
    acc = jnp.dot(window[start:start + TL], w_ref[0],
                  preferred_element_type=jnp.float32)
    for k in range(1, K):
        acc += jnp.dot(window[start + k:start + k + TL], w_ref[k],
                       preferred_element_type=jnp.float32)

    acc = acc + b_ref[...].astype(jnp.float32)  # (1, C_out) broadcasts over (TL, C_out)

    # Exact GELU (matches torch.nn.GELU default): 0.5 * x * (1 + erf(x / sqrt(2)))
    y = 0.5 * acc * (1.0 + lax.erf(acc * jnp.float32(0.7071067811865476)))
    o_ref[0] = y.astype(o_ref.dtype)


# -----------------------------------------------------------------------------
# NWC entry point (preferred layout between stacked conv layers)
# -----------------------------------------------------------------------------
def conv1d_same_gelu_nwc(x_nwc, weight, bias, *, tile_l=None,
                         compute_dtype=jnp.bfloat16, out_dtype=None):
    """'same'-padded Conv1d (stride 1) + bias + exact GELU, channels-last.

    x_nwc: (B, L, C_in); weight: (C_out, C_in, K) [PyTorch layout]; bias: (C_out,) or None.
    Returns (B, L, C_out) in out_dtype (default: x_nwc.dtype).  For the HBM-bound TPU
    generations keep activations bf16 in HBM between layers (x bf16 / out_dtype bf16).
    """
    B, L, C_in = x_nwc.shape
    C_out, C_in_w, K = weight.shape
    assert C_in == C_in_w, (C_in, C_in_w)
    if out_dtype is None:
        out_dtype = x_nwc.dtype
    if bias is None:                       # config.conv_bias == False
        bias = jnp.zeros((C_out,), jnp.float32)

    xbytes = jnp.dtype(x_nwc.dtype).itemsize
    obytes = jnp.dtype(out_dtype).itemsize
    cbytes = jnp.dtype(compute_dtype).itemsize

    # Halo block: >= 8 sublanes, covering the K-1 rows a conv window can reach past a tile.
    halo = max(8, _round_up(max(K - 1, 1), 8))

    if tile_l is None:
        # ~512 rows: per-step overhead amortized, enough grid steps for the pipeline to
        # fill, working set far below v7x's 64 MiB per-core VMEM.  Shrink only for very
        # large channel counts.
        budget = _vmem_capacity_bytes() // 4
        per_row = (2 * C_in * xbytes + 2 * C_out * obytes   # double-buffered in/out tiles
                   + (K + 2) * C_in * cbytes                # window + per-tap copies
                   + 3 * C_out * 4)                         # f32 accumulator + GELU temps
        tile_l = 512
        while tile_l > halo and tile_l * per_row > budget:
            tile_l //= 2
    tile_l = max(halo, _round_up(min(tile_l, _round_up(L, 8)), halo))
    n_l = pl.cdiv(L, tile_l)
    l_pad = n_l * tile_l
    hpt = tile_l // halo                   # halo blocks per tile
    max_hb = l_pad // halo - 1             # last valid halo-block index

    # Fast path: no HBM pad pass when L already tiles evenly (a multi-layer NWC pipeline
    # should keep L a multiple of the tile between layers).  Otherwise pad the tail once.
    if l_pad != L:
        x_nwc = jnp.pad(x_nwc, ((0, 0), (0, l_pad - L), (0, 0)))

    # (C_out, C_in, K) -> (K, C_in, C_out): each tap is one (C_in, C_out) MXU matmul.
    w_kio = jnp.transpose(weight, (2, 1, 0)).astype(compute_dtype)
    b_row = bias.reshape(1, C_out).astype(jnp.float32)

    # Scoped-VMEM sizing: double-buffered tiles/halos/weights + in-kernel temporaries
    # (compute-dtype window, per-tap shifted copies, f32 accumulator, GELU temps), 2x margin.
    est = (2 * tile_l * C_in * xbytes + 4 * halo * C_in * xbytes
           + 2 * tile_l * C_out * obytes
           + 2 * K * C_in * C_out * cbytes + 2 * C_out * 4
           + (tile_l + 2 * halo) * (K + 1) * C_in * cbytes
           + 3 * tile_l * C_out * 4)
    vmem_limit = int(min(_vmem_capacity_bytes() * 7 // 8, max(32 << 20, 2 * est)))

    cost = pl.CostEstimate(
        flops=2 * B * l_pad * C_in * C_out * K + 8 * B * l_pad * C_out,
        transcendentals=B * l_pad * C_out,
        bytes_accessed=(B * l_pad * (C_in * xbytes + C_out * obytes)
                        + K * C_in * C_out * cbytes + C_out * 4),
    )

    kernel = functools.partial(_conv1d_gelu_kernel, l_total=l_pad)

    out = pl.pallas_call(
        kernel,
        out_shape=jax.ShapeDtypeStruct((B, l_pad, C_out), out_dtype),
        grid_spec=pltpu.PrefetchScalarGridSpec(
            num_scalar_prefetch=0,
            grid=(B, n_l),
            in_specs=[
                pl.BlockSpec((1, tile_l, C_in), lambda b, l: (b, l, 0)),
                # Left halo: block just before the tile, clamped at the left edge.
                pl.BlockSpec((1, halo, C_in),
                             lambda b, l: (b, jnp.maximum(l * hpt - 1, 0), 0)),
                # Right halo: block just after the tile, clamped at the right edge.
                pl.BlockSpec((1, halo, C_in),
                             lambda b, l: (b, jnp.minimum((l + 1) * hpt, max_hb), 0)),
                pl.BlockSpec((K, C_in, C_out), lambda b, l: (0, 0, 0)),
                pl.BlockSpec((1, C_out), lambda b, l: (0, 0)),
            ],
            out_specs=pl.BlockSpec((1, tile_l, C_out), lambda b, l: (b, l, 0)),
        ),
        compiler_params=pltpu.CompilerParams(
            # Every (b, l) tile is independent -> both axes parallel (v7x megacore).
            dimension_semantics=("parallel", "parallel"),
            vmem_limit_bytes=vmem_limit,
        ),
        cost_estimate=cost,
    )(x_nwc, x_nwc, x_nwc, w_kio, b_row)

    return out[:, :L, :] if l_pad != L else out


# -----------------------------------------------------------------------------
# PyTorch-parity wrapper (NCW in / NCW out, like NoLayerNormConvLayer.forward)
# -----------------------------------------------------------------------------
def no_layer_norm_conv_layer(x_ncw, weight, bias=None, *, tile_l=None,
                             compute_dtype=jnp.float32):
    """GELU(Conv1d(x, padding='same', stride=1) + bias), PyTorch NCW layout, f32 parity.

    A full wav2vec stack should keep activations NWC (and bf16) in HBM between layers
    and call conv1d_same_gelu_nwc directly so the two transposes amortize away.
    """
    x_nwc = jnp.transpose(x_ncw, (0, 2, 1))
    out_nwc = conv1d_same_gelu_nwc(x_nwc, weight, bias, tile_l=tile_l,
                                   compute_dtype=compute_dtype)
    return jnp.transpose(out_nwc, (0, 2, 1))


# -----------------------------------------------------------------------------
# Pure-JAX reference (for correctness checks)
# -----------------------------------------------------------------------------
def _reference(x_ncw, weight, bias):
    K = weight.shape[2]
    pad_left = (K - 1) // 2
    pad_right = (K - 1) - pad_left
    y = lax.conv_general_dilated(
        x_ncw, weight,
        window_strides=(1,),
        padding=[(pad_left, pad_right)],
        dimension_numbers=("NCH", "OIH", "NCH"),
    ) + bias[None, :, None]
    return 0.5 * y * (1.0 + lax.erf(y / jnp.sqrt(2.0)))


if __name__ == "__main__":
    def make_case(key, B, C_in, C_out, K, L):
        kx, kw, kb = jax.random.split(key, 3)
        x = jax.random.normal(kx, (B, C_in, L), jnp.float32)          # NCW, like PyTorch
        bound = 1.0 / math.sqrt(C_in * K)                             # Conv1d default init
        w = jax.random.uniform(kw, (C_out, C_in, K), jnp.float32, -bound, bound)
        b = jax.random.uniform(kb, (C_out,), jnp.float32, -bound, bound)
        return x, w, b

    k1, k2, k3 = jax.random.split(jax.random.PRNGKey(0), 3)

    # Case 1: module's small synthetic config (conv_dim=(4, 8), kernel 3, stride 1).
    x, w, b = make_case(k1, B=2, C_in=4, C_out=8, K=3, L=16)
    ref = _reference(x, w, b)
    out = jax.block_until_ready(no_layer_norm_conv_layer(x, w, b))          # f32 parity
    assert out.shape == (2, 8, 16)
    assert jnp.allclose(out, ref, atol=1e-5, rtol=1e-5), "f32 parity mismatch"
    out_bf = jax.block_until_ready(
        no_layer_norm_conv_layer(x, w, b, compute_dtype=jnp.bfloat16))      # bf16 MXU path
    assert jnp.allclose(out_bf, ref, atol=5e-2, rtol=5e-2), "bf16-compute mismatch"

    # Case 2: multi-tile with L NOT a multiple of tile_l (ragged-tail pad path), K=5.
    x, w, b = make_case(k2, B=2, C_in=8, C_out=16, K=5, L=200)
    ref = _reference(x, w, b)
    out = jax.block_until_ready(
        no_layer_norm_conv_layer(x, w, b, tile_l=64, compute_dtype=jnp.float32))
    assert jnp.allclose(out, ref, atol=1e-4, rtol=1e-4), "ragged multi-tile mismatch"

    # Case 3: lane-dense channels, multi-tile fast path (L % tile_l == 0 -> no pad pass),
    # halos crossing every tile boundary.
    x, w, b = make_case(k3, B=1, C_in=128, C_out=128, K=3, L=256)
    ref = _reference(x, w, b)
    out = jax.block_until_ready(
        no_layer_norm_conv_layer(x, w, b, tile_l=64, compute_dtype=jnp.float32))
    assert jnp.allclose(out, ref, atol=1e-4, rtol=1e-4), "128-ch multi-tile mismatch"

    # Case 4: production-style NWC path with bf16 activations in HBM (bf16 in / bf16 out).
    x_nwc_bf16 = jnp.transpose(x, (0, 2, 1)).astype(jnp.bfloat16)
    ref_nwc = jnp.transpose(
        _reference(jnp.transpose(x_nwc_bf16.astype(jnp.float32), (0, 2, 1)), w, b),
        (0, 2, 1))
    out_nwc = jax.block_until_ready(conv1d_same_gelu_nwc(x_nwc_bf16, w, b, tile_l=64))
    assert out_nwc.dtype == jnp.bfloat16
    assert jnp.allclose(out_nwc.astype(jnp.float32), ref_nwc, atol=8e-2, rtol=8e-2), \
        "bf16 NWC mismatch"

    print("KERNEL_OK")
</pallas_src>

<mosaic_0001>
module attributes {stable_mosaic.version = 11 : i64} {
  func.func @_conv1d_gelu_kernel(%arg0: i32, %arg1: i32, %arg2: memref<1x16x4xf32, #tpu.memory_space<vmem>>, %arg3: memref<1x8x4xf32, #tpu.memory_space<vmem>>, %arg4: memref<1x8x4xf32, #tpu.memory_space<vmem>>, %arg5: memref<3x4x8xf32, #tpu.memory_space<vmem>>, %arg6: memref<1x8xf32, #tpu.memory_space<vmem>>, %arg7: memref<1x16x8xf32, #tpu.memory_space<vmem>>) attributes {dimension_semantics = [#tpu.dimension_semantics<parallel>, #tpu.dimension_semantics<parallel>], iteration_bounds = array<i64: 2, 1>, scalar_prefetch = 0 : i64, scratch_operands = 0 : i64, tpu.core_type = #tpu.core_type<tc>, window_params = [{transform_indices = @transform_0, window_bounds = array<i64: 1, 16, 4>}, {transform_indices = @transform_1, window_bounds = array<i64: 1, 8, 4>}, {transform_indices = @transform_2, window_bounds = array<i64: 1, 8, 4>}, {pipeline_mode = #tpu.pipeline_mode<synchronous>, transform_indices = @transform_3, window_bounds = array<i64: 3, 4, 8>}, {pipeline_mode = #tpu.pipeline_mode<synchronous>, transform_indices = @transform_4, window_bounds = array<i64: 1, 8>}, {transform_indices = @transform_5, window_bounds = array<i64: 1, 16, 8>}]} {
    %c16_i32 = arith.constant 16 : i32
    %0 = arith.muli %arg1, %c16_i32 : i32
    %1 = tpu.iota {dimensions = array<i32: 0>} : vector<8x1xi32>
    %c8_i32 = arith.constant 8 : i32
    %2 = arith.subi %0, %c8_i32 : i32
    %3 = vector.broadcast %2 : i32 to vector<8x1xi32>
    %4 = arith.addi %3, %1 : vector<8x1xi32>
    %c0_i32 = arith.constant 0 : i32
    %5 = vector.broadcast %c0_i32 : i32 to vector<8x1xi32>
    %6 = arith.cmpi sge, %4, %5 : vector<8x1xi32>
    %c0 = arith.constant 0 : index
    %c0_0 = arith.constant 0 : index
    %c0_1 = arith.constant 0 : index
    %7 = vector.load %arg3[%c0, %c0_0, %c0_1] : memref<1x8x4xf32, #tpu.memory_space<vmem>>, vector<1x8x4xf32>
    %8 = vector.shape_cast %7 : vector<1x8x4xf32> to vector<8x4xf32>
    %c0_i32_2 = arith.constant 0 : i32
    %9 = arith.sitofp %c0_i32_2 : i32 to f32
    %10 = vector.shape_cast %6 : vector<8x1xi1> to vector<8x1xi1>
    %11 = vector.broadcast %10 : vector<8x1xi1> to vector<8x4xi1>
    %12 = vector.broadcast %9 : f32 to vector<8x4xf32>
    %13 = arith.select %11, %8, %12 : vector<8x4xi1>, vector<8x4xf32>
    %c16_i32_3 = arith.constant 16 : i32
    %14 = arith.addi %0, %c16_i32_3 : i32
    %15 = vector.broadcast %14 : i32 to vector<8x1xi32>
    %16 = arith.addi %15, %1 : vector<8x1xi32>
    %c16_i32_4 = arith.constant 16 : i32
    %17 = vector.broadcast %c16_i32_4 : i32 to vector<8x1xi32>
    %18 = arith.cmpi slt, %16, %17 : vector<8x1xi32>
    %c0_5 = arith.constant 0 : index
    %c0_6 = arith.constant 0 : index
    %c0_7 = arith.constant 0 : index
    %19 = vector.load %arg4[%c0_5, %c0_6, %c0_7] : memref<1x8x4xf32, #tpu.memory_space<vmem>>, vector<1x8x4xf32>
    %20 = vector.shape_cast %19 : vector<1x8x4xf32> to vector<8x4xf32>
    %c0_i32_8 = arith.constant 0 : i32
    %21 = arith.sitofp %c0_i32_8 : i32 to f32
    %22 = vector.shape_cast %18 : vector<8x1xi1> to vector<8x1xi1>
    %23 = vector.broadcast %22 : vector<8x1xi1> to vector<8x4xi1>
    %24 = vector.broadcast %21 : f32 to vector<8x4xf32>
    %25 = arith.select %23, %20, %24 : vector<8x4xi1>, vector<8x4xf32>
    %c0_9 = arith.constant 0 : index
    %c0_10 = arith.constant 0 : index
    %c0_11 = arith.constant 0 : index
    %26 = vector.load %arg2[%c0_9, %c0_10, %c0_11] : memref<1x16x4xf32, #tpu.memory_space<vmem>>, vector<1x16x4xf32>
    %27 = vector.shape_cast %26 : vector<1x16x4xf32> to vector<16x4xf32>
    %28 = tpu.concatenate %13, %27, %25 in 0 : vector<8x4xf32>, vector<16x4xf32>, vector<8x4xf32> -> vector<32x4xf32>
    %29 = vector.extract_strided_slice %28 {offsets = [7, 0], sizes = [16, 4], strides = [1, 1]} : vector<32x4xf32> to vector<16x4xf32>
    %c0_12 = arith.constant 0 : index
    %c0_13 = arith.constant 0 : index
    %c0_14 = arith.constant 0 : index
    %30 = vector.load %arg5[%c0_12, %c0_13, %c0_14] : memref<3x4x8xf32, #tpu.memory_space<vmem>>, vector<1x4x8xf32>
    %31 = vector.shape_cast %30 : vector<1x4x8xf32> to vector<4x8xf32>
    %cst = arith.constant dense<0.000000e+00> : vector<16x8xf32>
    %32 = tpu.matmul %29, %31, %cst {dimension_numbers = #tpu.dot_dimension_numbers<[1], [0], [0], [1], [0, 0, 1, 1], [], []>} : vector<16x4xf32>, vector<4x8xf32>, vector<16x8xf32> -> vector<16x8xf32>
    %33 = vector.extract_strided_slice %28 {offsets = [8, 0], sizes = [16, 4], strides = [1, 1]} : vector<32x4xf32> to vector<16x4xf32>
    %c1 = arith.constant 1 : index
    %c0_15 = arith.constant 0 : index
    %c0_16 = arith.constant 0 : index
    %34 = vector.load %arg5[%c1, %c0_15, %c0_16] : memref<3x4x8xf32, #tpu.memory_space<vmem>>, vector<1x4x8xf32>
    %35 = vector.shape_cast %34 : vector<1x4x8xf32> to vector<4x8xf32>
    %cst_17 = arith.constant dense<0.000000e+00> : vector<16x8xf32>
    %36 = tpu.matmul %33, %35, %cst_17 {dimension_numbers = #tpu.dot_dimension_numbers<[1], [0], [0], [1], [0, 0, 1, 1], [], []>} : vector<16x4xf32>, vector<4x8xf32>, vector<16x8xf32> -> vector<16x8xf32>
    %37 = arith.addf %32, %36 : vector<16x8xf32>
    %38 = vector.extract_strided_slice %28 {offsets = [9, 0], sizes = [16, 4], strides = [1, 1]} : vector<32x4xf32> to vector<16x4xf32>
    %c2 = arith.constant 2 : index
    %c0_18 = arith.constant 0 : index
    %c0_19 = arith.constant 0 : index
    %39 = vector.load %arg5[%c2, %c0_18, %c0_19] : memref<3x4x8xf32, #tpu.memory_space<vmem>>, vector<1x4x8xf32>
    %40 = vector.shape_cast %39 : vector<1x4x8xf32> to vector<4x8xf32>
    %cst_20 = arith.constant dense<0.000000e+00> : vector<16x8xf32>
    %41 = tpu.matmul %38, %40, %cst_20 {dimension_numbers = #tpu.dot_dimension_numbers<[1], [0], [0], [1], [0, 0, 1, 1], [], []>} : vector<16x4xf32>, vector<4x8xf32>, vector<16x8xf32> -> vector<16x8xf32>
    %42 = arith.addf %37, %41 : vector<16x8xf32>
    %c0_21 = arith.constant 0 : index
    %c0_22 = arith.constant 0 : index
    %43 = vector.load %arg6[%c0_21, %c0_22] : memref<1x8xf32, #tpu.memory_space<vmem>>, vector<1x8xf32>
    %44 = vector.broadcast %43 : vector<1x8xf32> to vector<16x8xf32>
    %45 = arith.addf %42, %44 : vector<16x8xf32>
    %cst_23 = arith.constant 5.000000e-01 : f32
    %46 = vector.broadcast %cst_23 : f32 to vector<16x8xf32>
    %47 = arith.mulf %46, %45 : vector<16x8xf32>
    %cst_24 = arith.constant 0.707106769 : f32
    %48 = vector.broadcast %cst_24 : f32 to vector<16x8xf32>
    %49 = arith.mulf %45, %48 : vector<16x8xf32>
    %50 = math.erf %49 : vector<16x8xf32>
    %cst_25 = arith.constant 1.000000e+00 : f32
    %51 = vector.broadcast %cst_25 : f32 to vector<16x8xf32>
    %52 = arith.addf %51, %50 : vector<16x8xf32>
    %53 = arith.mulf %47, %52 : vector<16x8xf32>
    %c0_26 = arith.constant 0 : index
    %c0_27 = arith.constant 0 : index
    %c0_28 = arith.constant 0 : index
    %54 = vector.load %arg7[%c0_26, %c0_27, %c0_28] : memref<1x16x8xf32, #tpu.memory_space<vmem>>, vector<1x16x8xf32>
    %55 = vector.shape_cast %54 : vector<1x16x8xf32> to vector<16x8xf32>
    %56 = vector.shape_cast %53 : vector<16x8xf32> to vector<1x16x8xf32>
    tpu.vector_store %arg7[%c0_26, %c0_27, %c0_28], %56 {strides = array<i32>} : memref<1x16x8xf32, #tpu.memory_space<vmem>>, vector<1x16x8xf32>,
    return
  }
  func.func @transform_0(%arg0: i32, %arg1: i32) -> (i32, i32, i32) {
    %c0_i32 = arith.constant 0 : i32
    %c0_i32_0 = arith.constant 0 : i32
    return %arg0, %arg1, %c0_i32 : i32, i32, i32
  }
  func.func @transform_1(%arg0: i32, %arg1: i32) -> (i32, i32, i32) {
    %c2_i32 = arith.constant 2 : i32
    %0 = arith.muli %arg1, %c2_i32 : i32
    %c1_i32 = arith.constant 1 : i32
    %1 = arith.subi %0, %c1_i32 : i32
    %c0_i32 = arith.constant 0 : i32
    %2 = arith.maxsi %1, %c0_i32 : i32
    %c0_i32_0 = arith.constant 0 : i32
    %c0_i32_1 = arith.constant 0 : i32
    return %arg0, %2, %c0_i32_0 : i32, i32, i32
  }
  func.func @transform_2(%arg0: i32, %arg1: i32) -> (i32, i32, i32) {
    %c1_i32 = arith.constant 1 : i32
    %0 = arith.addi %arg1, %c1_i32 : i32
    %c2_i32 = arith.constant 2 : i32
    %1 = arith.muli %0, %c2_i32 : i32
    %c1_i32_0 = arith.constant 1 : i32
    %2 = arith.minsi %1, %c1_i32_0 : i32
    %c0_i32 = arith.constant 0 : i32
    %c0_i32_1 = arith.constant 0 : i32
    return %arg0, %2, %c0_i32 : i32, i32, i32
  }
  func.func @transform_3(%arg0: i32, %arg1: i32) -> (i32, i32, i32) {
    %c0_i32 = arith.constant 0 : i32
    %c0_i32_0 = arith.constant 0 : i32
    %c0_i32_1 = arith.constant 0 : i32
    %c0_i32_2 = arith.constant 0 : i32
    return %c0_i32, %c0_i32_0, %c0_i32_1 : i32, i32, i32
  }
  func.func @transform_4(%arg0: i32, %arg1: i32) -> (i32, i32) {
    %c0_i32 = arith.constant 0 : i32
    %c0_i32_0 = arith.constant 0 : i32
    %c0_i32_1 = arith.constant 0 : i32
    return %c0_i32, %c0_i32_0 : i32, i32
  }
  func.func @transform_5(%arg0: i32, %arg1: i32) -> (i32, i32, i32) {
    %c0_i32 = arith.constant 0 : i32
    %c0_i32_0 = arith.constant 0 : i32
    return %arg0, %arg1, %c0_i32 : i32, i32, i32
  }
}

</mosaic_0001>

<bundles_post_ra>
// kernel: tpu_custom_call.1
= control target key start
LH: loop header
LB: loop body
LE: loop exit
PB: predicated region body
PF: predicated region fallthrough
CT: control target
= control target key end

     0   :  { %s963_s18 = smov 0   ;;  %s965_s19 = smov 0   ;;  %s1027_s0 = inlined_call_operand.vmem [shape: f32[2,16,4], index: 0, kind: input, shape index: {}]   ;;  %s1028_s1 = inlined_call_operand.vmem [shape: f32[2,16,4], index: 1, kind: input, shape index: {}]   ;;  %s1029_s2 = inlined_call_operand.vmem [shape: f32[2,16,4], index: 2, kind: input, shape index: {}]   ;;  %s1030_s3 = inlined_call_operand.vmem [shape: f32[3,4,8], index: 3, kind: input, shape index: {}]   ;;  %s1031_s4 = inlined_call_operand.vmem [shape: f32[1,8], index: 4, kind: input, shape index: {}]   ;;  %s1032_s5 = inlined_call_operand.vmem [shape: f32[2,16,8], index: 5, kind: output, shape index: {}]  }
   0x1   :  { %s967_s20 = smov 0  }
   0x2 LB: > { %s27_s1 = sadd.s32 1, %s926_s19  ;;  %p823_p0 = scmp.ge.s32.totalorder %s930_s20, 1  ;;  %s930_s20 = sphi %s967_s20, %s15_s20   ;;  %s926_s19 = sphi %s965_s19, %s1034_s19   ;;  %s922_s18 = sphi %s963_s18, %s1033_s18  }
   0x3   : > { %p29_p1 = scmp.ge.s32.totalorder %s27_s1, 2  ;;  %p270_p2 = scmp.lt.s32.totalorder %s930_s20, 3 }
   0x5   : > { %s1036_s1 = smov (%p29_p1, %s27_s1), 0  ;;  %p271_p3 = pnand %p823_p0, %p270_p2 }
   0x6   : > { %v403_v0 = vld [vmem:[%s1030_s3] sm:$0xf] (!%p271_p3)  ;;  %vm413_vm0 = vcmask (!%p271_p3), 1043456   ;;  %p331_p4 = scmp.lt.s32.totalorder (!%p271_p3), %s922_s18, 1  ;;  %v839_v1 = vld [vmem:[%s1030_s3 + $0x8] sm:$0xf] (!%p271_p3) }
   0x7   : > { %274 = sbr.rel (%p271_p3) target bundleno = 265 (0x109), region = 40  ;;  %865 = vmatprep.subr.msk.mxu0 (!%p271_p3), %vm413_vm0, %v403_v0  ;;  %v832_v2 = vld [vmem:[%s1030_s3 + $0x4] sm:$0xf] (!%p271_p3)  ;;  %v932_v3 = vmov (!%p271_p3), 0.0   ;;  %vm406_vm1 = vcmask (!%p271_p3), 31744   ;;  %vm493_vm2 = vcmask (!%p271_p3), 1040384  }
   0x8   : > { %866 = vmatpush3.msk.msra.mxu0 (!%p271_p3), %vm413_vm0, %v403_v0  ;;  %860 = vmatprep.subr.msk.mxu1 (!%p271_p3), %vm413_vm0, %v832_v2  ;;  %v494_v4 = vrot.slane (!%p271_p3), %v932_v3, 7  ;;  %vm584_vm3 = vcmask (!%p271_p3), 1046528   ;;  %v588_v14 = vrot.slane (!%p271_p3), %v932_v3, 1  ;;  %v843_v19 = vld [vmem:[%s1031_s4] ss:$0 sm:$0xff] (!%p271_p3)  ;;  %vm693_vm4 = vcmask (!%p271_p3), 64512  }
   0x9   : > { %870 = vmatprep.subr.msk.mxu0 (!%p271_p3), %vm413_vm0, %v839_v1  ;;  %861 = vmatpush3.msk.msra.mxu1 (!%p271_p3), %vm413_vm0, %v832_v2 }
   0xe   : > { %s1038_s18 = smov (!%p331_p4, %s922_s18), 1 }
   0xf   : > { %s846_s26 = sshll.u32 %s1038_s18, 4 }
  0x10   : > { %s338_s29 = scalar_lea.vmem %s1027_s0, %s846_s26  ;;  %s380_s9 = scalar_lea.vmem %s1032_s5, %s846_s26 }
  0x11   : > { %v401_v5 = vld [vmem:[%s338_s29] sm:$0xff]  ;;  %v402_v6 = vld [vmem:[%s338_s29 + $0x8] sm:$0xff] }
  0x12   : > { %v495_v7 = vrot.slane %v401_v5, 7  ;;  %v497_v8 = vrot.slane %v402_v6, 7  ;;  %862 = vmatprep.mubr.msk.f32.mxu1 %vm406_vm1, %v401_v5  ;;  %v585_v9 = vrot.slane %v401_v5, 1  ;;  %v586_v10 = vrot.slane %v402_v6, 1 }
  0x13   : > { %863 = vmatmul.mubr.msk.f32.vlgmr.msra.gmra.mrb[0].mxu1 %vm406_vm1, %v402_v6 }
  0x14   : > { %v496_v11 = vsel %vm493_vm2, %v494_v4, %v495_v7  ;;  %v498_v12 = vsel %vm493_vm2, %v495_v7, %v497_v8  ;;  %v587_v13 = vsel %vm584_vm3, %v585_v9, %v586_v10  ;;  %v589_v15 = vsel %vm584_vm3, %v586_v10, %v588_v14 }
  0x15   : > { %867 = vmatprep.mubr.msk.f32.mxu0 %vm406_vm1, %v496_v11 }
  0x16   : > { %868 = vmatmul.mubr.msk.f32.vlgmr.msra.gmra.mrb[0].mxu0 %vm406_vm1, %v498_v12 }
  0x17   : > { %871 = vmatpush3.msk.msra.mxu0 %vm413_vm0, %v839_v1  ;;  %872 = vmatprep.mubr.msk.f32.mxu0 %vm406_vm1, %v587_v13 }
  0x1e   : > { %873 = vmatmul.mubr.msk.f32.vlgmr.msra.gmra.mrb[0].mxu0 %vm406_vm1, %v589_v15 }
  0xe6   : > { %v864_v16 = vpop.f32.mrb[0].mxu1 }
  0xe7   : > { %v483_v17 = vpop.f32.mrb[1].mxu1 }
  0xf1   : > { %v874_v18 = vpop.f32.mrb[0].mxu0 }
  0xf2   : > { %v875_v20 = vadd.f32 %v874_v18, %v864_v16  ;;  %v663_v21 = vpop.f32.mrb[1].mxu0 }
  0xf3   : > { %v876_v22 = vadd.f32 %v663_v21, %v483_v17 }
  0xf4   : > { %v682_v23 = vadd.f32 %v875_v20, %v843_v19 }
  0xf5   : > { %v681_v24 = vadd.f32 %v876_v22, %v843_v19 }
  0xf6   : > { %v686_v25 = vmul.f32 0.70710677, %v682_v23  ;;  %v684_v29 = vmul.f32 0.5, %v682_v23 }
  0xf7   : > { %v685_v26 = vmul.f32 0.70710677, %v681_v24  ;;  %v683_v31 = vmul.f32 0.5, %v681_v24 }
  0xf8   : > { %904 = verf.f32 %v686_v25 }
  0xf9   : > { %906 = verf.f32 %v685_v26 }
 0x102   : > { %v905_v27 = vpop.eup %904 }
 0x103   : > { %v907_v28 = vpop.eup %906  ;;  %v690_v30 = vadd.f32 1.0, %v905_v27 }
 0x104   : > { %v689_v32 = vadd.f32 1.0, %v907_v28 }
 0x105   : > { %v692_v33 = vmul.f32 %v690_v30, %v684_v29 }
 0x106   : > { %v691_v34 = vmul.f32 %v689_v32, %v683_v31 }
 0x107   : > { %695 = vst.msk [vmem:[%s380_s9 + $0x8] sm:$0xff] %vm693_vm4, %v692_v33 }
 0x108   : > { %694 = vst.msk [vmem:[%s380_s9] sm:$0xff] %vm693_vm4, %v691_v34 }
 0x109 PF: > { %s15_s20 = sadd.s32 1, %s930_s20   ;;  %s1033_s18 = smov %s926_s19 }
 0x10a   : > { %p12_p5 = scmp.ge.s32.totalorder %s15_s20, 4   ;;  %s1034_s19 = smov %s1036_s1 }
 0x10c   :  { %14 = sbr.rel (!%p12_p5) target bundleno = 2 (0x2), region = 78 }

</bundles_post_ra>
